<compile_context>
chip_gen: v7x
topology: tpu7x:2x2x1
jax: 0.10.0
libtpu: 0.0.40
codegen_flags: <defaults>
</compile_context>

<pallas_src>
import functools

import jax
import jax.numpy as jnp
from jax.experimental import pallas as pl
from jax.experimental.pallas import tpu as pltpu

LN_EPS = 1e-5  # nn.LayerNorm default


def _round_up(x, m):
    return (x + m - 1) // m * m


def prenorm_linear_kernel(x_ref, gamma_ref, beta_ref, w_ref, b_ref, o_ref,
                          *, d_valid, d_padded):
    # x_ref     : (tm, Dp) row tile
    # gamma/beta: (1, Dp)  LayerNorm affine params (zero-padded past d_valid)
    # w_ref     : (Dp, tn), b_ref: (1, tn)  -> the wrapped fn (Linear) column tile
    x = x_ref[...].astype(jnp.float32)

    # LayerNorm stats in f32 over the *true* feature width; padded lanes masked out.
    if d_valid != d_padded:
        lane = jax.lax.broadcasted_iota(jnp.int32, x.shape, dimension=1)
        valid = lane < d_valid
        x = jnp.where(valid, x, 0.0)

    inv_d = jnp.float32(1.0 / d_valid)
    mean = jnp.sum(x, axis=-1, keepdims=True) * inv_d
    centered = x - mean
    if d_valid != d_padded:
        centered = jnp.where(valid, centered, 0.0)   # zero x_hat in padded lanes
    var = jnp.sum(centered * centered, axis=-1, keepdims=True) * inv_d
    x_hat = centered * jax.lax.rsqrt(var + LN_EPS)

    y = x_hat * gamma_ref[...].astype(jnp.float32) + beta_ref[...].astype(jnp.float32)

    # Feed the MXU in the weight dtype (bf16 weights => bf16 operands on v6e/v7x),
    # accumulate in f32.  For f32 weights this is numerically identical to before.
    y = y.astype(w_ref.dtype)
    out = jnp.dot(y, w_ref[...], preferred_element_type=jnp.float32)
    out = out + b_ref[...].astype(jnp.float32)
    o_ref[...] = out.astype(o_ref.dtype)


@functools.partial(jax.jit, static_argnames=("tm", "tn"))
def prenorm_linear(x, gamma, beta, w, b, *, tm=256, tn=256):
    """PreNorm(dim, Linear(dim, hidden)) forward:  Linear(LayerNorm(x)).

    x: (B, N, D) -> (B, N, H)
    """
    B, N, D = x.shape
    H = w.shape[1]
    M = B * N

    # Lane-dense padding: feature / hidden axes to multiples of 128.
    Dp = _round_up(D, 128)
    Hp = _round_up(H, 128)

    # Row tile: large (amortize per-step overhead, fill MXU), sublane-aligned.
    # TODO(synk): for bf16 inputs round the row tile to a multiple of 16 (sublane packing).
    tm = min(tm, _round_up(M, 8))
    Mp = _round_up(M, tm)

    # Hidden tile: multiple of 128 that divides Hp (256 preferred on v6e/v7x).
    tn = min(tn, Hp)
    if Hp % tn != 0:
        tn = 128
    grid = (Mp // tm, Hp // tn)   # j (hidden) is the inner axis -> x tile DMA'd once per i

    x2d = jnp.pad(x.reshape(M, D), ((0, Mp - M), (0, Dp - D)))
    gamma2d = jnp.pad(gamma.reshape(1, D), ((0, 0), (0, Dp - D)))
    beta2d = jnp.pad(beta.reshape(1, D), ((0, 0), (0, Dp - D)))
    w_p = jnp.pad(w, ((0, Dp - D), (0, Hp - H)))
    b2d = jnp.pad(b.reshape(1, H), ((0, 0), (0, Hp - H)))

    kernel = functools.partial(prenorm_linear_kernel, d_valid=D, d_padded=Dp)

    # VMEM budget: double-buffered x / W / out tiles + small resident params, with
    # headroom.  Capped at 64 MiB so a config that fits v5e/v6e cannot overshoot v7x.
    bpe_x = x2d.dtype.itemsize
    bpe_w = w_p.dtype.itemsize
    tile_bytes = 2 * (tm * Dp * bpe_x + Dp * tn * bpe_w + tm * tn * bpe_x) \
        + 4 * Dp * 4 + 2 * tn * 4
    vmem_limit = int(min(max(2 * tile_bytes + (8 << 20), 32 << 20), 64 << 20))

    cost = pl.CostEstimate(
        flops=2 * Mp * Dp * Hp + 6 * Mp * Dp,        # matmul + LN elementwise
        transcendentals=Mp,                          # one rsqrt per row
        bytes_accessed=(Mp * Dp + Mp * Hp) * bpe_x + Dp * Hp * bpe_w,
    )

    out2d = pl.pallas_call(
        kernel,
        out_shape=jax.ShapeDtypeStruct((Mp, Hp), x.dtype),
        grid_spec=pltpu.PrefetchScalarGridSpec(
            num_scalar_prefetch=0,
            grid=grid,
            in_specs=[
                pl.BlockSpec((tm, Dp), lambda i, j: (i, 0)),   # x row tile
                pl.BlockSpec((1, Dp), lambda i, j: (0, 0)),    # gamma (resident)
                pl.BlockSpec((1, Dp), lambda i, j: (0, 0)),    # beta  (resident)
                pl.BlockSpec((Dp, tn), lambda i, j: (0, j)),   # W column tile
                pl.BlockSpec((1, tn), lambda i, j: (0, j)),    # bias tile
            ],
            out_specs=pl.BlockSpec((tm, tn), lambda i, j: (i, j)),
        ),
        compiler_params=pltpu.CompilerParams(
            dimension_semantics=("parallel", "parallel"),
            vmem_limit_bytes=vmem_limit,
        ),
        cost_estimate=cost,
    )(x2d, gamma2d, beta2d, w_p, b2d)

    return out2d[:M, :H].reshape(B, N, H)


def reference(x, gamma, beta, w, b):
    xf = x.astype(jnp.float32)
    mean = jnp.mean(xf, axis=-1, keepdims=True)
    var = jnp.mean((xf - mean) ** 2, axis=-1, keepdims=True)
    y = (xf - mean) * jax.lax.rsqrt(var + LN_EPS) * gamma + beta
    return (y @ w.astype(jnp.float32) + b).astype(x.dtype)


if __name__ == "__main__":
    # Small shapes consistent with a transformer block: batch=2, seq=8, dim=32, hidden=32.
    B, N, D, H = 2, 8, 32, 32

    key = jax.random.PRNGKey(0)
    kx, kw, kb = jax.random.split(key, 3)

    x = jax.random.normal(kx, (B, N, D), dtype=jnp.float32)

    # nn.LayerNorm default init -> weight=1, bias=0.
    gamma = jnp.ones((D,), dtype=jnp.float32)
    beta = jnp.zeros((D,), dtype=jnp.float32)
    # fn = Linear(D, H): deterministic random weights.
    w = jax.random.normal(kw, (D, H), dtype=jnp.float32) * (1.0 / jnp.sqrt(D))
    b = jax.random.normal(kb, (H,), dtype=jnp.float32) * 0.01

    out = prenorm_linear(x, gamma, beta, w, b)
    jax.block_until_ready(out)

    ref = reference(x, gamma, beta, w, b)
    assert out.shape == (B, N, H)
    assert jnp.allclose(out, ref, atol=1e-4, rtol=1e-4), "mismatch vs reference"

    print("KERNEL_OK")
</pallas_src>

<mosaic_0001>
module attributes {stable_mosaic.version = 11 : i64} {
  func.func @prenorm_linear_kernel(%arg0: i32, %arg1: i32, %arg2: memref<16x128xf32, #tpu.memory_space<vmem>>, %arg3: memref<1x128xf32, #tpu.memory_space<vmem>>, %arg4: memref<1x128xf32, #tpu.memory_space<vmem>>, %arg5: memref<128x128xf32, #tpu.memory_space<vmem>>, %arg6: memref<1x128xf32, #tpu.memory_space<vmem>>, %arg7: memref<16x128xf32, #tpu.memory_space<vmem>>) attributes {dimension_semantics = [#tpu.dimension_semantics<parallel>, #tpu.dimension_semantics<parallel>], iteration_bounds = array<i64: 1, 1>, scalar_prefetch = 0 : i64, scratch_operands = 0 : i64, tpu.core_type = #tpu.core_type<tc>, window_params = [{transform_indices = @transform_0, window_bounds = array<i64: 16, 128>}, {pipeline_mode = #tpu.pipeline_mode<synchronous>, transform_indices = @transform_1, window_bounds = array<i64: 1, 128>}, {pipeline_mode = #tpu.pipeline_mode<synchronous>, transform_indices = @transform_2, window_bounds = array<i64: 1, 128>}, {transform_indices = @transform_3, window_bounds = array<i64: 128, 128>}, {transform_indices = @transform_4, window_bounds = array<i64: 1, 128>}, {transform_indices = @transform_5, window_bounds = array<i64: 16, 128>}]} {
    %c0 = arith.constant 0 : index
    %c0_0 = arith.constant 0 : index
    %0 = vector.load %arg2[%c0, %c0_0] : memref<16x128xf32, #tpu.memory_space<vmem>>, vector<16x128xf32>
    %1 = tpu.iota {dimensions = array<i32: 1>} : vector<16x128xi32>
    %c32_i32 = arith.constant 32 : i32
    %2 = vector.broadcast %c32_i32 : i32 to vector<16x128xi32>
    %3 = arith.cmpi slt, %1, %2 : vector<16x128xi32>
    %cst = arith.constant 0.000000e+00 : f32
    %4 = vector.broadcast %cst : f32 to vector<16x128xf32>
    %5 = arith.select %3, %0, %4 : vector<16x128xi1>, vector<16x128xf32>
    %cst_1 = arith.constant dense<0.000000e+00> : vector<16xf32>
    %6 = vector.multi_reduction <add>, %5, %cst_1 [1] : vector<16x128xf32> to vector<16xf32>
    %7 = vector.shape_cast %6 : vector<16xf32> to vector<16x1xf32>
    %cst_2 = arith.constant 3.125000e-02 : f32
    %8 = vector.broadcast %cst_2 : f32 to vector<16x1xf32>
    %9 = arith.mulf %7, %8 : vector<16x1xf32>
    %10 = vector.broadcast %9 : vector<16x1xf32> to vector<16x128xf32>
    %11 = arith.subf %5, %10 : vector<16x128xf32>
    %cst_3 = arith.constant 0.000000e+00 : f32
    %12 = vector.broadcast %cst_3 : f32 to vector<16x128xf32>
    %13 = arith.select %3, %11, %12 : vector<16x128xi1>, vector<16x128xf32>
    %14 = arith.mulf %13, %13 : vector<16x128xf32>
    %cst_4 = arith.constant dense<0.000000e+00> : vector<16xf32>
    %15 = vector.multi_reduction <add>, %14, %cst_4 [1] : vector<16x128xf32> to vector<16xf32>
    %16 = vector.shape_cast %15 : vector<16xf32> to vector<16x1xf32>
    %cst_5 = arith.constant 3.125000e-02 : f32
    %17 = vector.broadcast %cst_5 : f32 to vector<16x1xf32>
    %18 = arith.mulf %16, %17 : vector<16x1xf32>
    %cst_6 = arith.constant 9.99999974E-6 : f32
    %19 = vector.broadcast %cst_6 : f32 to vector<16x1xf32>
    %20 = arith.addf %18, %19 : vector<16x1xf32>
    %21 = math.rsqrt %20 : vector<16x1xf32>
    %22 = vector.broadcast %21 : vector<16x1xf32> to vector<16x128xf32>
    %23 = arith.mulf %13, %22 : vector<16x128xf32>
    %c0_7 = arith.constant 0 : index
    %c0_8 = arith.constant 0 : index
    %24 = vector.load %arg3[%c0_7, %c0_8] : memref<1x128xf32, #tpu.memory_space<vmem>>, vector<1x128xf32>
    %25 = vector.broadcast %24 : vector<1x128xf32> to vector<16x128xf32>
    %26 = arith.mulf %23, %25 : vector<16x128xf32>
    %c0_9 = arith.constant 0 : index
    %c0_10 = arith.constant 0 : index
    %27 = vector.load %arg4[%c0_9, %c0_10] : memref<1x128xf32, #tpu.memory_space<vmem>>, vector<1x128xf32>
    %28 = vector.broadcast %27 : vector<1x128xf32> to vector<16x128xf32>
    %29 = arith.addf %26, %28 : vector<16x128xf32>
    %c0_11 = arith.constant 0 : index
    %c0_12 = arith.constant 0 : index
    %30 = vector.load %arg5[%c0_11, %c0_12] : memref<128x128xf32, #tpu.memory_space<vmem>>, vector<128x128xf32>
    %cst_13 = arith.constant dense<0.000000e+00> : vector<16x128xf32>
    %31 = tpu.matmul %29, %30, %cst_13 {dimension_numbers = #tpu.dot_dimension_numbers<[1], [0], [0], [1], [0, 0, 1, 1], [], []>} : vector<16x128xf32>, vector<128x128xf32>, vector<16x128xf32> -> vector<16x128xf32>
    %c0_14 = arith.constant 0 : index
    %c0_15 = arith.constant 0 : index
    %32 = vector.load %arg6[%c0_14, %c0_15] : memref<1x128xf32, #tpu.memory_space<vmem>>, vector<1x128xf32>
    %33 = vector.broadcast %32 : vector<1x128xf32> to vector<16x128xf32>
    %34 = arith.addf %31, %33 : vector<16x128xf32>
    %c0_16 = arith.constant 0 : index
    %c0_17 = arith.constant 0 : index
    %35 = vector.load %arg7[%c0_16, %c0_17] : memref<16x128xf32, #tpu.memory_space<vmem>>, vector<16x128xf32>
    tpu.vector_store %arg7[%c0_16, %c0_17], %34 {strides = array<i32>} : memref<16x128xf32, #tpu.memory_space<vmem>>, vector<16x128xf32>,
    return
  }
  func.func @transform_0(%arg0: i32, %arg1: i32) -> (i32, i32) {
    %c0_i32 = arith.constant 0 : i32
    %c0_i32_0 = arith.constant 0 : i32
    return %arg0, %c0_i32 : i32, i32
  }
  func.func @transform_1(%arg0: i32, %arg1: i32) -> (i32, i32) {
    %c0_i32 = arith.constant 0 : i32
    %c0_i32_0 = arith.constant 0 : i32
    %c0_i32_1 = arith.constant 0 : i32
    return %c0_i32, %c0_i32_0 : i32, i32
  }
  func.func @transform_2(%arg0: i32, %arg1: i32) -> (i32, i32) {
    %c0_i32 = arith.constant 0 : i32
    %c0_i32_0 = arith.constant 0 : i32
    %c0_i32_1 = arith.constant 0 : i32
    return %c0_i32, %c0_i32_0 : i32, i32
  }
  func.func @transform_3(%arg0: i32, %arg1: i32) -> (i32, i32) {
    %c0_i32 = arith.constant 0 : i32
    %c0_i32_0 = arith.constant 0 : i32
    return %c0_i32, %arg1 : i32, i32
  }
  func.func @transform_4(%arg0: i32, %arg1: i32) -> (i32, i32) {
    %c0_i32 = arith.constant 0 : i32
    %c0_i32_0 = arith.constant 0 : i32
    return %c0_i32, %arg1 : i32, i32
  }
  func.func @transform_5(%arg0: i32, %arg1: i32) -> (i32, i32) {
    %c0_i32 = arith.constant 0 : i32
    return %arg0, %arg1 : i32, i32
  }
}

</mosaic_0001>

<bundles_post_ra>
// kernel: prenorm_linear.1
= control target key start
LH: loop header
LB: loop body
LE: loop exit
PB: predicated region body
PF: predicated region fallthrough
CT: control target
= control target key end

     0   :  { %v22_v0 = vlaneseq  ;;  %s368_s0 = inlined_call_operand.vmem [shape: f32[16,128], index: 0, kind: input, shape index: {}]   ;;  %s369_s3 = inlined_call_operand.vmem [shape: f32[128,128], index: 3, kind: input, shape index: {}]   ;;  %s370_s1 = inlined_call_operand.vmem [shape: f32[1,128], index: 1, kind: input, shape index: {}]   ;;  %s371_s2 = inlined_call_operand.vmem [shape: f32[1,128], index: 2, kind: input, shape index: {}]   ;;  %s372_s4 = inlined_call_operand.vmem [shape: f32[1,128], index: 4, kind: input, shape index: {}]   ;;  %s373_s5 = inlined_call_operand.vmem [shape: f32[16,128], index: 5, kind: output, shape index: {}]  }
   0x1   :  { %v20_v1 = vld [vmem:[%s368_s0] sm:$0xff]  ;;  %v21_v3 = vld [vmem:[%s368_s0 + $0x8] sm:$0xff]  ;;  %v71_v8 = vld [vmem:[%s369_s3 + $0x10] sm:$0xff] }
   0x2   :  { %v23_v2 = vand.u32 127, %v22_v0  ;;  %v69_v6 = vld [vmem:[%s369_s3] sm:$0xff]  ;;  %v70_v7 = vld [vmem:[%s369_s3 + $0x8] sm:$0xff]  ;;  %v72_v10 = vld [vmem:[%s369_s3 + $0x18] sm:$0xff] }
   0x3   :  { %v229_v9 = vpack.c.bf16 %v70_v7, %v69_v6  ;;  %v233_v11 = vpack.c.bf16 %v72_v10, %v71_v8  ;;  %v73_v22 = vld [vmem:[%s369_s3 + $0x20] sm:$0xff]  ;;  %v74_v23 = vld [vmem:[%s369_s3 + $0x28] sm:$0xff]  ;;  %v75_v25 = vld [vmem:[%s369_s3 + $0x30] sm:$0xff] }
   0x4   :  { %vm24_vm0 = vcmp.lt.s32.totalorder %v23_v2, 32  ;;  %v237_v24 = vpack.c.bf16 %v74_v23, %v73_v22  ;;  %v76_v26 = vld [vmem:[%s369_s3 + $0x38] sm:$0xff]  ;;  %v77_v28 = vld [vmem:[%s369_s3 + $0x40] sm:$0xff]  ;;  %v78_v29 = vld [vmem:[%s369_s3 + $0x48] sm:$0xff] }
   0x5   :  { %v25_v4 = vsel %vm24_vm0, %v20_v1, 0.0  ;;  %v26_v5 = vsel %vm24_vm0, %v21_v3, 0.0  ;;  %230 = vmatprep.subr.bf16.mxu0 %v229_v9  ;;  %v241_v27 = vpack.c.bf16 %v76_v26, %v75_v25  ;;  %v245_v30 = vpack.c.bf16 %v78_v29, %v77_v28  ;;  %v79_v31 = vld [vmem:[%s369_s3 + $0x50] sm:$0xff]  ;;  %v80_v32 = vld [vmem:[%s369_s3 + $0x58] sm:$0xff]  ;;  %v81_v33 = vld [vmem:[%s369_s3 + $0x60] sm:$0xff] }
   0x6   :  { %27 = vadd.xlane.f32.xlu0 %v25_v4  ;;  %232 = vmatpush3.bf16.msra.mxu0 %v229_v9  ;;  %v249_v34 = vpack.c.bf16 %v80_v32, %v79_v31  ;;  %v82_v35 = vld [vmem:[%s369_s3 + $0x68] sm:$0xff]  ;;  %v83_v37 = vld [vmem:[%s369_s3 + $0x70] sm:$0xff]  ;;  %v84_v38 = vld [vmem:[%s369_s3 + $0x78] sm:$0xff] }
   0x7   :  { %234 = vmatprep.subr.bf16.mxu0 %v233_v11  ;;  %v253_v36 = vpack.c.bf16 %v82_v35, %v81_v33  ;;  %v257_v39 = vpack.c.bf16 %v84_v38, %v83_v37  ;;  %v173_v47 = vld [vmem:[%s370_s1] ss:$0 sm:$0xff] }
   0x8   :  { %v174_v49 = vld [vmem:[%s371_s2] ss:$0 sm:$0xff] }
   0x9   :  { %v175_v56 = vld [vmem:[%s372_s4] ss:$0 sm:$0xff] }
   0xa   :  { %29 = vadd.xlane.f32.xlu0 %v26_v5  ;;  %236 = vmatpush3.bf16.msra.mxu0 %v233_v11 }
   0xb   :  { %238 = vmatprep.subr.bf16.mxu0 %v237_v24 }
   0xe   :  { %240 = vmatpush3.bf16.msra.mxu0 %v237_v24 }
   0xf   :  { %242 = vmatprep.subr.bf16.mxu0 %v241_v27 }
  0x12   :  { %244 = vmatpush3.bf16.msra.mxu0 %v241_v27 }
  0x13   :  { %246 = vmatprep.subr.bf16.mxu0 %v245_v30 }
  0x16   :  { %248 = vmatpush3.bf16.msra.mxu0 %v245_v30 }
  0x17   :  { %250 = vmatprep.subr.bf16.mxu0 %v249_v34 }
  0x1a   :  { %252 = vmatpush3.bf16.msra.mxu0 %v249_v34 }
  0x1b   :  { %254 = vmatprep.subr.bf16.mxu0 %v253_v36 }
  0x1e   :  { %256 = vmatpush3.bf16.msra.mxu0 %v253_v36 }
  0x1f   :  { %258 = vmatprep.subr.bf16.mxu0 %v257_v39 }
  0x22   :  { %260 = vmatpush3.bf16.msra.mxu0 %v257_v39 }
  0x93   :  { %v28_v12 = vpop.xlane.xlu0 %27 }
  0x94   :  { %v31_v13 = vmul.f32 0.03125, %v28_v12 }
  0x96   :  { %v33_v14 = vsub.f32 %v25_v4, %v31_v13 }
  0x97   :  { %v30_v15 = vpop.xlane.xlu0 %29 }
  0x98   :  { %v32_v16 = vmul.f32 0.03125, %v30_v15  ;;  %v35_v17 = vsel %vm24_vm0, %v33_v14, 0.0 }
  0x99   :  { %v37_v18 = vmul.f32 %v35_v17, %v35_v17 }
  0x9a   :  { %v34_v19 = vsub.f32 %v26_v5, %v32_v16 }
  0x9b   :  { %39 = vadd.xlane.f32.xlu1 %v37_v18 }
  0x9c   :  { %v36_v20 = vsel %vm24_vm0, %v34_v19, 0.0 }
  0x9d   :  { %v38_v21 = vmul.f32 %v36_v20, %v36_v20 }
  0x9f   :  { %41 = vadd.xlane.f32.xlu1 %v38_v21 }
 0x128   :  { %v40_v40 = vpop.xlane.xlu1 %39 }
 0x129   :  { %v43_v41 = vmul.f32 0.03125, %v40_v40 }
 0x12b   :  { %v45_v42 = vadd.f32 1e-05, %v43_v41 }
 0x12c   :  { %v42_v43 = vpop.xlane.xlu1 %41 }
 0x12d   :  { %261 = vrsqrt.f32 %v45_v42  ;;  %v44_v44 = vmul.f32 0.03125, %v42_v43 }
 0x12f   :  { %v46_v45 = vadd.f32 1e-05, %v44_v44 }
 0x131   :  { %263 = vrsqrt.f32 %v46_v45 }
 0x137   :  { %v262_v46 = vpop.eup %261 }
 0x138   :  { %v49_v48 = vmul.f32 %v262_v46, %v35_v17 }
 0x13a   :  { %v58_v50 = vmul.f32 %v173_v47, %v49_v48 }
 0x13b   :  { %v264_v51 = vpop.eup %263 }
 0x13c   :  { %v50_v52 = vmul.f32 %v264_v51, %v36_v20  ;;  %v67_v53 = vadd.f32 %v174_v49, %v58_v50 }
 0x13e   :  { %v59_v54 = vmul.f32 %v173_v47, %v50_v52  ;;  %226 = vmatprep.mubr.f32.mxu0 %v67_v53 }
 0x140   :  { %v68_v55 = vadd.f32 %v174_v49, %v59_v54 }
 0x142   :  { %227 = vmatmul.mubr.f32.vlgmr.msra.gmra.mrb[0].mxu0 %v68_v55 }
 0x215   :  { %v228_v57 = vpop.f32.mrb[0].mxu0 }
 0x216   :  { %v164_v58 = vadd.f32 %v228_v57, %v175_v56  ;;  %v158_v59 = vpop.f32.mrb[1].mxu0 }
 0x217   :  { %v159_v60 = vadd.f32 %v175_v56, %v158_v59 }
 0x218   :  { %168 = vst [vmem:[%s373_s5 + $0x8] sm:$0xff] %v164_v58 }
 0x219   :  { %167 = vst [vmem:[%s373_s5] sm:$0xff] %v159_v60 }

</bundles_post_ra>
